<compile_context>
chip_gen: v7x
topology: tpu7x:2x2x1
jax: 0.10.0
libtpu: 0.0.40
codegen_flags: <defaults>
</compile_context>

<pallas_src>
import functools

import jax
import jax.numpy as jnp
from jax.experimental import pallas as pl
from jax.experimental.pallas import tpu as pltpu

_MASK_VALUE = -9000000000000000.0      # same constant as the torch module
_PROJ_TILE = 512                       # projection row tile (footprint is tiny)


def _round_up(x, m):
    return ((x + m - 1) // m) * m


def _chip_defaults():
    """(attention row_tile, vmem_limit_bytes) chosen per TPU generation."""
    try:
        vmem_cap = pltpu.get_tpu_info().vmem_capacity_bytes
    except Exception:
        vmem_cap = 64 * 1024 * 1024          # assume the smallest (v7x-sized)
    if vmem_cap >= 96 * 1024 * 1024:         # v5e / v6e: 128 MiB physical VMEM
        return 512, 100 * 1024 * 1024
    # v7x: 64 MiB physical -> leave headroom for compiler scratch / temps.
    return 256, 48 * 1024 * 1024


def _resident(block_shape, index_map):
    """Spec for an operand whose block never changes across the grid: a single
    buffer (pl.Buffered(1)) instead of the default double buffer."""
    return pl.BlockSpec(block_shape, index_map, pipeline_mode=pl.Buffered(1))


# --------------------------------------------------------------------------
# Kernel 1: projection.  Per row tile: Wh = h @ W  and  Wh @ [a1 | a2].
# --------------------------------------------------------------------------
def _project_kernel(h_ref, w_ref, a12_ref, wh_ref, wh12_ref):
    # Wh in f32; the fused [Wh a1 | Wh a2] matmul runs off the f32 Wh so the
    # attention logits keep full precision even when Wh is stored as bf16.
    wh = jnp.dot(h_ref[...], w_ref[...], preferred_element_type=jnp.float32)
    wh12_ref[...] = jnp.dot(wh, a12_ref[...], preferred_element_type=jnp.float32)
    wh_ref[...] = wh.astype(wh_ref.dtype)          # bf16 store when bf16_matmul


# --------------------------------------------------------------------------
# Kernel 2: masked row softmax + aggregation, one row tile per grid step.
# --------------------------------------------------------------------------
def _attn_kernel(adj_ref, wh1_ref, wh2t_ref, wh_ref, out_ref, *att_refs,
                 alpha, concat, n_valid):
    # Attention logits for this row tile against all (lane-padded) columns:
    #   e_ij = LeakyReLU(Wh_i . a1 + Wh_j . a2)
    e = wh1_ref[...] + wh2t_ref[...]                 # (TR,1)+(1,NP) -> (TR,NP)
    e = jnp.maximum(e, alpha * e)                    # LeakyReLU, 0 < alpha < 1

    # Mask non-edges (adj is raw int8/bool, ragged tiles contain garbage that
    # never survives the masking below).  Columns >= N get -inf so they carry
    # exactly zero probability: edgeless rows normalise over N like torch.
    att = jnp.where(adj_ref[...] > 0, e, _MASK_VALUE)
    col = jax.lax.broadcasted_iota(jnp.int32, att.shape, 1)
    att = jnp.where(col < n_valid, att, -jnp.inf)

    # Row-wise softmax (full row resident -> exact, no online rescale needed).
    m = jnp.max(att, axis=1, keepdims=True)
    p = jnp.exp(att - m)
    s = jnp.sum(p, axis=1, keepdims=True)
    inv = pl.reciprocal(s, approx=True)              # EUP slot, frees the VALU
    inv = inv * (2.0 - s * inv)                      # one Newton step -> ~exact

    wh = wh_ref[...]                                 # resident (bf16 or f32)
    if att_refs:
        # Attention matrix requested: normalise once and reuse for the matmul.
        p = p * inv
        att_refs[0][...] = p.astype(att_refs[0].dtype)
        hp = jnp.dot(p.astype(wh.dtype), wh, preferred_element_type=jnp.float32)
    else:
        # Attention dropped: defer normalisation so the 1/s multiply touches
        # only (row_tile, F) instead of (row_tile, N).
        hp = jnp.dot(p.astype(wh.dtype), wh, preferred_element_type=jnp.float32)
        hp = hp * inv

    if concat:
        # ELU with a clamped exp so the unselected branch never overflows.
        hp = jnp.where(hp > 0, hp, jnp.exp(jnp.minimum(hp, 0.0)) - 1.0)
    out_ref[...] = hp.astype(out_ref.dtype)


# --------------------------------------------------------------------------
# Wrapper
# --------------------------------------------------------------------------
def gat_forward(h, adj, W, a, *, alpha=0.2, concat=True, row_tile=None,
                bf16_matmul=True, return_attention=True, vmem_limit_bytes=None):
    """Pallas GraphAttentionLayer.forward.

    Returns (h_prime, attention) like the torch module; only h_prime when
    return_attention=False (skips the N^2 f32 attention store).  Pass adj as
    int8/bool; float adjacency is accepted for torch parity but costs an extra
    N^2 conversion pass in XLA.  bf16_matmul=True (default) runs
    attention @ Wh on the MXU in bf16 with f32 accumulation.
    """
    if not (0.0 < alpha < 1.0):
        raise ValueError("alpha must be in (0, 1)")
    default_tile, default_vmem = _chip_defaults()
    if row_tile is None:
        row_tile = default_tile
    if vmem_limit_bytes is None:
        vmem_limit_bytes = default_vmem
    if row_tile % 8 != 0:
        raise ValueError("row_tile must be a multiple of 8 (sublane)")

    N, f_in = h.shape
    f_out = W.shape[1]
    assert a.shape == (2 * f_out, 1)

    # Lane-pad only the cheap O(N*F) operands.  adj (the O(N^2) operand) is
    # consumed raw; ragged tiles are masked inside the kernel.
    n_pad = _round_up(N, 128)
    f_pad = _round_up(f_out, 128)

    h_p = jnp.pad(h.astype(jnp.float32), ((0, n_pad - N), (0, 0)))
    w_p = jnp.pad(W.astype(jnp.float32), ((0, 0), (0, f_pad - f_out)))
    a12 = jnp.concatenate([a[:f_out, :], a[f_out:, :]], axis=1)       # (F_out, 2)
    a12_p = jnp.pad(a12.astype(jnp.float32), ((0, f_pad - f_out), (0, 0)))

    if jnp.issubdtype(adj.dtype, jnp.floating):
        # Torch-parity fallback; prefer passing int8/bool to skip this pass.
        adj = (adj > 0).astype(jnp.int8)

    wh_dtype = jnp.bfloat16 if bf16_matmul else jnp.float32
    cparams = pltpu.CompilerParams(
        dimension_semantics=("parallel",),
        vmem_limit_bytes=vmem_limit_bytes,
    )

    # ---- kernel 1: row-tiled projection  Wh = h @ W,  [Wh a1 | Wh a2] ----
    grid_p = pl.cdiv(n_pad, _PROJ_TILE)
    wh, wh12 = pl.pallas_call(
        _project_kernel,
        grid=(grid_p,),
        in_specs=[
            pl.BlockSpec((_PROJ_TILE, f_in), lambda i: (i, 0)),       # h row tile
            _resident((f_in, f_pad), lambda i: (0, 0)),               # W
            _resident((f_pad, 2), lambda i: (0, 0)),                  # [a1 | a2]
        ],
        out_specs=(
            pl.BlockSpec((_PROJ_TILE, f_pad), lambda i: (i, 0)),      # Wh
            pl.BlockSpec((_PROJ_TILE, 2), lambda i: (i, 0)),          # [Wh a1, Wh a2]
        ),
        out_shape=(
            jax.ShapeDtypeStruct((n_pad, f_pad), wh_dtype),
            jax.ShapeDtypeStruct((n_pad, 2), jnp.float32),
        ),
        compiler_params=cparams,
    )(h_p, w_p, a12_p)

    # O(N)-byte layout plumbing only (negligible vs the O(N^2) kernel traffic).
    wh1 = wh12[:, 0:1]          # (n_pad, 1): broadcast down the rows of a tile
    wh2t = wh12[:, 1:2].T       # (1, n_pad): broadcast across the columns

    # ---- kernel 2: masked softmax + aggregation, tiled over rows ----
    grid_a = pl.cdiv(N, row_tile)
    kernel = functools.partial(_attn_kernel, alpha=float(alpha), concat=concat,
                               n_valid=N)
    out_specs = [pl.BlockSpec((row_tile, f_pad), lambda i: (i, 0))]   # h_prime
    out_shape = [jax.ShapeDtypeStruct((n_pad, f_pad), jnp.float32)]
    if return_attention:
        out_specs.append(pl.BlockSpec((row_tile, n_pad), lambda i: (i, 0)))
        out_shape.append(jax.ShapeDtypeStruct((N, N), jnp.float32))

    outs = pl.pallas_call(
        kernel,
        grid=(grid_a,),
        in_specs=[
            pl.BlockSpec((row_tile, n_pad), lambda i: (i, 0)),        # adj rows (raw)
            pl.BlockSpec((row_tile, 1), lambda i: (i, 0)),            # Wh a1 slice
            _resident((1, n_pad), lambda i: (0, 0)),                  # (Wh a2)^T
            _resident((n_pad, f_pad), lambda i: (0, 0)),              # Wh
        ],
        out_specs=tuple(out_specs),
        out_shape=tuple(out_shape),
        compiler_params=cparams,
    )(adj, wh1, wh2t, wh)

    h_prime = outs[0][:N, :f_out]
    if return_attention:
        return h_prime, outs[1]
    return h_prime


# --------------------------------------------------------------------------
# Pure-JAX reference + demo
# --------------------------------------------------------------------------
def _xavier_uniform(key, shape, gain):
    fan_in, fan_out = shape
    bound = gain * jnp.sqrt(6.0 / (fan_in + fan_out))
    return jax.random.uniform(key, shape, jnp.float32, -bound, bound)


def _reference(h, adj, W, a, alpha=0.2, concat=True):
    wh = h @ W
    f_out = W.shape[1]
    e = wh @ a[:f_out, :] + (wh @ a[f_out:, :]).T
    e = jnp.where(e > 0, e, alpha * e)
    att = jnp.where(adj > 0, e, _MASK_VALUE)
    att = jax.nn.softmax(att, axis=1)
    h_prime = att @ wh
    if concat:
        h_prime = jnp.where(h_prime > 0,
                            h_prime, jnp.exp(jnp.minimum(h_prime, 0.0)) - 1.0)
    return h_prime, att


if __name__ == "__main__":
    # N=300 nodes exercises ragged row AND column tiles; in=48, out=24.
    N, F_IN, F_OUT = 300, 48, 24
    ALPHA = 0.2

    key = jax.random.PRNGKey(0)
    k_w, k_a, k_h, k_adj = jax.random.split(key, 4)

    W = _xavier_uniform(k_w, (F_IN, F_OUT), gain=1.414)
    a = _xavier_uniform(k_a, (2 * F_OUT, 1), gain=1.414)
    h = jax.random.normal(k_h, (N, F_IN), jnp.float32)

    # Adjacency supplied directly as int8 (with self-loops): no N^2 float ->
    # int8 conversion / padding pass anywhere.
    adj_i8 = jnp.maximum((jax.random.uniform(k_adj, (N, N)) > 0.5).astype(jnp.int8),
                         jnp.eye(N, dtype=jnp.int8))

    ref_hp, ref_att = _reference(h, adj_i8, W, a, alpha=ALPHA, concat=True)

    # 1) Default path: chip-tuned row tile, bf16 MXU for attention @ Wh.
    hp, att = gat_forward(h, adj_i8, W, a, alpha=ALPHA, concat=True)
    jax.block_until_ready((hp, att))
    assert jnp.allclose(att, ref_att, atol=2e-3, rtol=2e-3)
    assert jnp.allclose(hp, ref_hp, atol=5e-2, rtol=5e-2)

    # 2) f32 MXU path with a small row tile (forces a multi-tile ragged grid).
    hp32, att32 = gat_forward(h, adj_i8, W, a, alpha=ALPHA, concat=True,
                              row_tile=128, bf16_matmul=False)
    jax.block_until_ready((hp32, att32))
    assert jnp.allclose(att32, ref_att, atol=2e-3, rtol=2e-3)
    assert jnp.allclose(hp32, ref_hp, atol=2e-3, rtol=2e-3)

    # 3) Attention matrix dropped (deferred softmax normalisation), f32 path.
    hp_na = gat_forward(h, adj_i8, W, a, alpha=ALPHA, concat=True,
                        bf16_matmul=False, return_attention=False)
    jax.block_until_ready(hp_na)
    assert jnp.allclose(hp_na, ref_hp, atol=2e-3, rtol=2e-3)

    print("KERNEL_OK")
</pallas_src>

<mosaic_0001>
module attributes {stable_mosaic.version = 11 : i64} {
  func.func @_project_kernel(%arg0: i32, %arg1: memref<512x48xf32, #tpu.memory_space<vmem>>, %arg2: memref<48x128xf32, #tpu.memory_space<vmem>>, %arg3: memref<128x2xf32, #tpu.memory_space<vmem>>, %arg4: memref<512x128xbf16, #tpu.memory_space<vmem>>, %arg5: memref<512x2xf32, #tpu.memory_space<vmem>>) attributes {dimension_semantics = [#tpu.dimension_semantics<parallel>], iteration_bounds = array<i64: 1>, scalar_prefetch = 0 : i64, scratch_operands = 0 : i64, tpu.core_type = #tpu.core_type<tc>, window_params = [{transform_indices = @transform_0, window_bounds = array<i64: 512, 48>}, {pipeline_mode = #tpu.pipeline_mode<synchronous>, transform_indices = @transform_1, window_bounds = array<i64: 48, 128>}, {pipeline_mode = #tpu.pipeline_mode<synchronous>, transform_indices = @transform_2, window_bounds = array<i64: 128, 2>}, {transform_indices = @transform_3, window_bounds = array<i64: 512, 128>}, {transform_indices = @transform_4, window_bounds = array<i64: 512, 2>}]} {
    %c0 = arith.constant 0 : index
    %c0_0 = arith.constant 0 : index
    %0 = vector.load %arg1[%c0, %c0_0] : memref<512x48xf32, #tpu.memory_space<vmem>>, vector<512x48xf32>
    %c0_1 = arith.constant 0 : index
    %c0_2 = arith.constant 0 : index
    %1 = vector.load %arg2[%c0_1, %c0_2] : memref<48x128xf32, #tpu.memory_space<vmem>>, vector<48x128xf32>
    %cst = arith.constant dense<0.000000e+00> : vector<512x128xf32>
    %2 = tpu.matmul %0, %1, %cst {dimension_numbers = #tpu.dot_dimension_numbers<[1], [0], [0], [1], [0, 0, 1, 1], [], []>} : vector<512x48xf32>, vector<48x128xf32>, vector<512x128xf32> -> vector<512x128xf32>
    %c0_3 = arith.constant 0 : index
    %c0_4 = arith.constant 0 : index
    %3 = vector.load %arg3[%c0_3, %c0_4] : memref<128x2xf32, #tpu.memory_space<vmem>>, vector<128x2xf32>
    %cst_5 = arith.constant dense<0.000000e+00> : vector<512x2xf32>
    %4 = tpu.matmul %2, %3, %cst_5 {dimension_numbers = #tpu.dot_dimension_numbers<[1], [0], [0], [1], [0, 0, 1, 1], [], []>} : vector<512x128xf32>, vector<128x2xf32>, vector<512x2xf32> -> vector<512x2xf32>
    %c0_6 = arith.constant 0 : index
    %c0_7 = arith.constant 0 : index
    %5 = vector.load %arg5[%c0_6, %c0_7] : memref<512x2xf32, #tpu.memory_space<vmem>>, vector<512x2xf32>
    tpu.vector_store %arg5[%c0_6, %c0_7], %4 {strides = array<i32>} : memref<512x2xf32, #tpu.memory_space<vmem>>, vector<512x2xf32>,
    %6 = arith.truncf %2 : vector<512x128xf32> to vector<512x128xbf16>
    %c0_8 = arith.constant 0 : index
    %c0_9 = arith.constant 0 : index
    %7 = vector.load %arg4[%c0_8, %c0_9] : memref<512x128xbf16, #tpu.memory_space<vmem>>, vector<512x128xbf16>
    tpu.vector_store %arg4[%c0_8, %c0_9], %6 {strides = array<i32>} : memref<512x128xbf16, #tpu.memory_space<vmem>>, vector<512x128xbf16>,
    return
  }
  func.func @transform_0(%arg0: i32) -> (i32, i32) {
    %c0_i32 = arith.constant 0 : i32
    %c0_i32_0 = arith.constant 0 : i32
    return %arg0, %c0_i32 : i32, i32
  }
  func.func @transform_1(%arg0: i32) -> (i32, i32) {
    %c0_i32 = arith.constant 0 : i32
    %c0_i32_0 = arith.constant 0 : i32
    %c0_i32_1 = arith.constant 0 : i32
    return %c0_i32, %c0_i32_0 : i32, i32
  }
  func.func @transform_2(%arg0: i32) -> (i32, i32) {
    %c0_i32 = arith.constant 0 : i32
    %c0_i32_0 = arith.constant 0 : i32
    %c0_i32_1 = arith.constant 0 : i32
    return %c0_i32, %c0_i32_0 : i32, i32
  }
  func.func @transform_3(%arg0: i32) -> (i32, i32) {
    %c0_i32 = arith.constant 0 : i32
    %c0_i32_0 = arith.constant 0 : i32
    return %arg0, %c0_i32 : i32, i32
  }
  func.func @transform_4(%arg0: i32) -> (i32, i32) {
    %c0_i32 = arith.constant 0 : i32
    %c0_i32_0 = arith.constant 0 : i32
    return %arg0, %c0_i32 : i32, i32
  }
}

</mosaic_0001>

<bundles_post_ra>
// kernel: tpu_custom_call.1
= control target key start
LH: loop header
LB: loop body
LE: loop exit
PB: predicated region body
PF: predicated region fallthrough
CT: control target
= control target key end

     0   :  { %10 = vsyncpa [#allocation3], 0  ;;  %vm87_vm0 = vcmask 392192   ;;  %vm1066_vm1 = vcmask 15360   ;;  %s3105_s0 = inlined_call_operand.vmem [shape: f32[384,48], index: 0, kind: input, shape index: {}]   ;;  %s3106_s1 = inlined_call_operand.vmem [shape: f32[48,128], index: 1, kind: input, shape index: {}]   ;;  %s3107_s2 = inlined_call_operand.vmem [shape: f32[128,2], index: 2, kind: input, shape index: {}]   ;;  %s3108_s3 = inlined_call_operand.hbm [shape: bf16[384,128], index: 3, kind: output, shape index: {0}]   ;;  %s3109_s4 = inlined_call_operand.vmem [shape: f32[384,2], index: 4, kind: output, shape index: {1}]  }
   0x1   :  { %v81_v0 = vld [vmem:[%s3106_s1] sm:$0xff]  ;;  %v82_v1 = vld [vmem:[%s3106_s1 + $0x8] sm:$0xff]  ;;  %v83_v3 = vld [vmem:[%s3106_s1 + $0x10] sm:$0xff] }
   0x2   :  { %v2464_v2 = vpack.c.bf16 %v82_v1, %v81_v0  ;;  %v84_v4 = vld [vmem:[%s3106_s1 + $0x18] sm:$0xff]  ;;  %v85_v6 = vld [vmem:[%s3106_s1 + $0x20] sm:$0xff]  ;;  %v86_v7 = vld [vmem:[%s3106_s1 + $0x28] sm:$0xff] }
   0x3   :  { %v2468_v5 = vpack.c.bf16 %v84_v4, %v83_v3  ;;  %v17_v8 = vld [vmem:[%s3105_s0] sm:$0xff]  ;;  %v2472_v9 = vpack.c.bf16 %v86_v7, %v85_v6  ;;  %v18_v10 = vld [vmem:[%s3105_s0 + $0x8] sm:$0xff]  ;;  %v19_v11 = vld [vmem:[%s3105_s0 + $0x10] sm:$0xff] }
   0x4   :  { %2465 = vmatprep.subr.bf16.mxu0 %v2464_v2  ;;  %2240 = vmatprep.mubr.msk.f32.mxu0 %vm87_vm0, %v17_v8  ;;  %v20_v12 = vld [vmem:[%s3105_s0 + $0x18] sm:$0xff]  ;;  %v21_v13 = vld [vmem:[%s3105_s0 + $0x20] sm:$0xff]  ;;  %v22_v14 = vld [vmem:[%s3105_s0 + $0x28] sm:$0xff] }
   0x5   :  { %2467 = vmatpush3.bf16.msra.mxu0 %v2464_v2  ;;  %v23_v15 = vld [vmem:[%s3105_s0 + $0x30] sm:$0xff]  ;;  %v24_v16 = vld [vmem:[%s3105_s0 + $0x38] sm:$0xff]  ;;  %v665_v17 = vld [vmem:[%s3107_s2] sm:$0xff] }
   0x6   :  { %2469 = vmatprep.subr.bf16.mxu0 %v2468_v5  ;;  %v666_v18 = vld [vmem:[%s3107_s2 + $0x8] sm:$0xff]  ;;  %v667_v19 = vld [vmem:[%s3107_s2 + $0x10] sm:$0xff]  ;;  %v668_v20 = vld [vmem:[%s3107_s2 + $0x18] sm:$0xff] }
   0x7   :  { %v25_v21 = vld [vmem:[%s3105_s0 + $0x40] sm:$0xff]  ;;  %v2476_v22 = vpack.c.bf16 %v666_v18, %v665_v17  ;;  %v2480_v23 = vpack.c.bf16 %v668_v20, %v667_v19  ;;  %v670_v25 = vld [vmem:[%s3107_s2 + $0x28] sm:$0xff]  ;;  %v27_v27 = vld [vmem:[%s3105_s0 + $0x50] sm:$0xff] }
   0x8   :  { %v669_v24 = vld [vmem:[%s3107_s2 + $0x20] sm:$0xff]  ;;  %v26_v26 = vld [vmem:[%s3105_s0 + $0x48] sm:$0xff]  ;;  %v671_v29 = vld [vmem:[%s3107_s2 + $0x30] sm:$0xff] }
   0x9   :  { %2471 = vmatpush3.bf16.msra.mxu0 %v2468_v5  ;;  %2508 = vmatprep.subr.bf16.mxu1 %v2476_v22  ;;  %v2484_v28 = vpack.c.bf16 %v670_v25, %v669_v24  ;;  %v672_v30 = vld [vmem:[%s3107_s2 + $0x38] sm:$0xff]  ;;  %v29_v32 = vld [vmem:[%s3105_s0 + $0x60] sm:$0xff]  ;;  %v674_v35 = vld [vmem:[%s3107_s2 + $0x48] sm:$0xff] }
   0xa   :  { %2473 = vmatprep.subr.bf16.mxu0 %v2472_v9  ;;  %2516 = vmatpush3.bf16.msra.mxu1 %v2476_v22  ;;  %v28_v31 = vld [vmem:[%s3105_s0 + $0x58] sm:$0xff]  ;;  %v2488_v33 = vpack.c.bf16 %v672_v30, %v671_v29  ;;  %v673_v34 = vld [vmem:[%s3107_s2 + $0x40] sm:$0xff]  ;;  %v30_v36 = vld [vmem:[%s3105_s0 + $0x68] sm:$0xff] }
   0xb   :  { %2509 = vmatprep.subr.bf16.mxu1 %v2480_v23  ;;  %v31_v37 = vld [vmem:[%s3105_s0 + $0x70] sm:$0xff]  ;;  %v2492_v38 = vpack.c.bf16 %v674_v35, %v673_v34  ;;  %v676_v40 = vld [vmem:[%s3107_s2 + $0x58] sm:$0xff]  ;;  %v33_v42 = vld [vmem:[%s3105_s0 + $0x80] sm:$0xff] }
   0xc   :  { %v675_v39 = vld [vmem:[%s3107_s2 + $0x50] sm:$0xff]  ;;  %v32_v41 = vld [vmem:[%s3105_s0 + $0x78] sm:$0xff]  ;;  %v677_v44 = vld [vmem:[%s3107_s2 + $0x60] sm:$0xff] }
   0xd   :  { %2475 = vmatpush3.bf16.msra.mxu0 %v2472_v9  ;;  %v2496_v43 = vpack.c.bf16 %v676_v40, %v675_v39  ;;  %v678_v45 = vld [vmem:[%s3107_s2 + $0x68] sm:$0xff]  ;;  %v35_v47 = vld [vmem:[%s3105_s0 + $0x90] sm:$0xff]  ;;  %v680_v50 = vld [vmem:[%s3107_s2 + $0x78] sm:$0xff] }
   0xe   :  { %2477 = vmatprep.subr.bf16.mxu0 %v2476_v22  ;;  %2517 = vmatpush3.bf16.msra.mxu1 %v2480_v23  ;;  %v34_v46 = vld [vmem:[%s3105_s0 + $0x88] sm:$0xff]  ;;  %v2500_v48 = vpack.c.bf16 %v678_v45, %v677_v44  ;;  %v679_v49 = vld [vmem:[%s3107_s2 + $0x70] sm:$0xff]  ;;  %v36_v51 = vld [vmem:[%s3105_s0 + $0x98] sm:$0xff] }
   0xf   :  { %2510 = vmatprep.subr.bf16.mxu1 %v2484_v28  ;;  %v37_v52 = vld [vmem:[%s3105_s0 + $0xa0] sm:$0xff]  ;;  %v2504_v53 = vpack.c.bf16 %v680_v50, %v679_v49  ;;  %v38_v54 = vld [vmem:[%s3105_s0 + $0xa8] sm:$0xff]  ;;  %v39_v55 = vld [vmem:[%s3105_s0 + $0xb0] sm:$0xff] }
  0x10   :  { %2241 = vmatmul.mubr.msk.f32.vlgmr.msra.gmra.mrb[0].mxu0 %vm87_vm0, %v18_v10  ;;  %v40_v56 = vld [vmem:[%s3105_s0 + $0xb8] sm:$0xff]  ;;  %v41_v57 = vld [vmem:[%s3105_s0 + $0xc0] sm:$0xff]  ;;  %v42_v58 = vld [vmem:[%s3105_s0 + $0xc8] sm:$0xff] }
  0x11   :  { %2243 = vmatprep.mubr.msk.f32.mxu0 %vm87_vm0, %v19_v11  ;;  %2479 = vmatpush3.bf16.msra.mxu0 %v2476_v22  ;;  %v43_v59 = vld [vmem:[%s3105_s0 + $0xd0] sm:$0xff]  ;;  %v44_v60 = vld [vmem:[%s3105_s0 + $0xd8] sm:$0xff]  ;;  %v45_v61 = vld [vmem:[%s3105_s0 + $0xe0] sm:$0xff] }
  0x12   :  { %2481 = vmatprep.subr.bf16.mxu0 %v2480_v23  ;;  %2518 = vmatpush3.bf16.msra.mxu1 %v2484_v28  ;;  %v46_v62 = vld [vmem:[%s3105_s0 + $0xe8] sm:$0xff]  ;;  %v47_v63 = vld [vmem:[%s3105_s0 + $0xf0] sm:$0xff]  ;;  %v48_v0 = vld [vmem:[%s3105_s0 + $0xf8] sm:$0xff] }
  0x13   :  { %2511 = vmatprep.subr.bf16.mxu1 %v2488_v33  ;;  %v49_v1 = vld [vmem:[%s3105_s0 + $0x100] sm:$0xff]  ;;  %v50_v2 = vld [vmem:[%s3105_s0 + $0x108] sm:$0xff]  ;;  %v51_v3 = vld [vmem:[%s3105_s0 + $0x110] sm:$0xff] }
  0x14   :  { %2244 = vmatmul.mubr.msk.f32.gmra.mrb[2].mxu0 %vm87_vm0, %v20_v12  ;;  %v52_v4 = vld [vmem:[%s3105_s0 + $0x118] sm:$0xff]  ;;  %v53_v5 = vld [vmem:[%s3105_s0 + $0x120] sm:$0xff]  ;;  %v54_v6 = vld [vmem:[%s3105_s0 + $0x128] sm:$0xff] }
  0x15   :  { %2246 = vmatprep.mubr.msk.f32.mxu0 %vm87_vm0, %v21_v13  ;;  %2483 = vmatpush3.bf16.msra.mxu0 %v2480_v23  ;;  %v55_v7 = vld [vmem:[%s3105_s0 + $0x130] sm:$0xff]  ;;  %v56_v8 = vld [vmem:[%s3105_s0 + $0x138] sm:$0xff]  ;;  %v57_v9 = vld [vmem:[%s3105_s0 + $0x140] sm:$0xff] }
  0x16   :  { %2485 = vmatprep.subr.bf16.mxu0 %v2484_v28  ;;  %2519 = vmatpush3.bf16.msra.mxu1 %v2488_v33  ;;  %v58_v10 = vld [vmem:[%s3105_s0 + $0x148] sm:$0xff]  ;;  %v59_v11 = vld [vmem:[%s3105_s0 + $0x150] sm:$0xff]  ;;  %v60_v12 = vld [vmem:[%s3105_s0 + $0x158] sm:$0xff] }
  0x17   :  { %2512 = vmatprep.subr.bf16.mxu1 %v2492_v38  ;;  %v61_v13 = vld [vmem:[%s3105_s0 + $0x160] sm:$0xff]  ;;  %v66_v18 = vld [vmem:[%s3105_s0 + $0x188] sm:$0xff]  ;;  %v67_v19 = vld [vmem:[%s3105_s0 + $0x190] sm:$0xff] }
  0x18   :  { %2247 = vmatmul.mubr.msk.f32.gmra.mrb[4].mxu0 %vm87_vm0, %v22_v14  ;;  %v62_v14 = vld [vmem:[%s3105_s0 + $0x168] sm:$0xff]  ;;  %v65_v17 = vld [vmem:[%s3105_s0 + $0x180] sm:$0xff]  ;;  %v68_v20 = vld [vmem:[%s3105_s0 + $0x198] sm:$0xff] }
  0x19   :  { %2249 = vmatprep.mubr.msk.f32.mxu0 %vm87_vm0, %v23_v15  ;;  %2487 = vmatpush3.bf16.msra.mxu0 %v2484_v28  ;;  %v63_v15 = vld [vmem:[%s3105_s0 + $0x170] sm:$0xff]  ;;  %v70_v22 = vld [vmem:[%s3105_s0 + $0x1a8] sm:$0xff]  ;;  %v72_v24 = vld [vmem:[%s3105_s0 + $0x1b8] sm:$0xff] }
  0x1a   :  { %2489 = vmatprep.subr.bf16.mxu0 %v2488_v33  ;;  %2520 = vmatpush3.bf16.msra.mxu1 %v2492_v38  ;;  %v71_v23 = vld [vmem:[%s3105_s0 + $0x1b0] sm:$0xff]  ;;  %v73_v25 = vld [vmem:[%s3105_s0 + $0x1c0] sm:$0xff]  ;;  %v76_v28 = vld [vmem:[%s3105_s0 + $0x1d8] sm:$0xff] }
  0x1b   :  { %2513 = vmatprep.subr.bf16.mxu1 %v2496_v43  ;;  %v77_v29 = vld [vmem:[%s3105_s0 + $0x1e0] sm:$0xff]  ;;  %v78_v30 = vld [vmem:[%s3105_s0 + $0x1e8] sm:$0xff] }
  0x1c   :  { %2250 = vmatmul.mubr.msk.f32.gmra.mrb[6].mxu0 %vm87_vm0, %v24_v16  ;;  %v64_v16 = vld [vmem:[%s3105_s0 + $0x178] sm:$0xff] }
  0x1d   :  { %2252 = vmatprep.mubr.msk.f32.mxu0 %vm87_vm0, %v25_v21  ;;  %2491 = vmatpush3.bf16.msra.mxu0 %v2488_v33  ;;  %v69_v21 = vld [vmem:[%s3105_s0 + $0x1a0] sm:$0xff] }
  0x1e   :  { %2493 = vmatprep.subr.bf16.mxu0 %v2492_v38  ;;  %2521 = vmatpush3.bf16.msra.mxu1 %v2496_v43 }
  0x1f   :  { %2514 = vmatprep.subr.bf16.mxu1 %v2500_v48 }
  0x20   :  { %2253 = vmatmul.mubr.msk.f32.gmra.mrb[8].mxu0 %vm87_vm0, %v26_v26  ;;  %v74_v26 = vld [vmem:[%s3105_s0 + $0x1c8] sm:$0xff] }
  0x21   :  { %2255 = vmatprep.mubr.msk.f32.mxu0 %vm87_vm0, %v27_v27  ;;  %2495 = vmatpush3.bf16.msra.mxu0 %v2492_v38  ;;  %v75_v27 = vld [vmem:[%s3105_s0 + $0x1d0] sm:$0xff] }
  0x22   :  { %2497 = vmatprep.subr.bf16.mxu0 %v2496_v43  ;;  %2522 = vmatpush3.bf16.msra.mxu1 %v2500_v48 }
  0x23   :  { %2515 = vmatprep.subr.bf16.mxu1 %v2504_v53 }
  0x24   :  { %2256 = vmatmul.mubr.msk.f32.gmra.mrb[10].mxu0 %vm87_vm0, %v28_v31  ;;  %v79_v31 = vld [vmem:[%s3105_s0 + $0x1f0] sm:$0xff] }
  0x25   :  { %2258 = vmatprep.mubr.msk.f32.mxu0 %vm87_vm0, %v29_v32  ;;  %2499 = vmatpush3.bf16.msra.mxu0 %v2496_v43  ;;  %v80_v32 = vld [vmem:[%s3105_s0 + $0x1f8] sm:$0xff] }
  0x26   :  { %2501 = vmatprep.subr.bf16.mxu0 %v2500_v48  ;;  %2523 = vmatpush3.bf16.msra.mxu1 %v2504_v53 }
  0x28   :  { %2259 = vmatmul.mubr.msk.f32.gmra.mrb[12].mxu0 %vm87_vm0, %v30_v36 }
  0x29   :  { %2261 = vmatprep.mubr.msk.f32.mxu0 %vm87_vm0, %v31_v37  ;;  %2503 = vmatpush3.bf16.msra.mxu0 %v2500_v48 }
  0x2a   :  { %2505 = vmatprep.subr.bf16.mxu0 %v2504_v53 }
  0x2c   :  { %2262 = vmatmul.mubr.msk.f32.gmra.mrb[14].mxu0 %vm87_vm0, %v32_v41 }
  0x2d   :  { %2264 = vmatprep.mubr.msk.f32.mxu0 %vm87_vm0, %v33_v42  ;;  %2507 = vmatpush3.bf16.msra.mxu0 %v2504_v53 }
  0x30   :  { %2265 = vmatmul.mubr.msk.f32.gmra.mrb[16].mxu0 %vm87_vm0, %v34_v46 }
  0x31   :  { %2267 = vmatprep.mubr.msk.f32.mxu0 %vm87_vm0, %v35_v47 }
  0x34   :  { %2268 = vmatmul.mubr.msk.f32.gmra.mrb[18].mxu0 %vm87_vm0, %v36_v51 }
  0x35   :  { %2270 = vmatprep.mubr.msk.f32.mxu0 %vm87_vm0, %v37_v52 }
  0x38   :  { %2271 = vmatmul.mubr.msk.f32.gmra.mrb[20].mxu0 %vm87_vm0, %v38_v54 }
  0x39   :  { %2273 = vmatprep.mubr.msk.f32.mxu0 %vm87_vm0, %v39_v55 }
  0x3c   :  { %2274 = vmatmul.mubr.msk.f32.gmra.mrb[22].mxu0 %vm87_vm0, %v40_v56 }
  0x3d   :  { %2276 = vmatprep.mubr.msk.f32.mxu0 %vm87_vm0, %v41_v57 }
  0x40   :  { %2277 = vmatmul.mubr.msk.f32.gmra.mrb[24].mxu0 %vm87_vm0, %v42_v58 }
  0x41   :  { %2279 = vmatprep.mubr.msk.f32.mxu0 %vm87_vm0, %v43_v59 }
  0x44   :  { %2280 = vmatmul.mubr.msk.f32.gmra.mrb[26].mxu0 %vm87_vm0, %v44_v60 }
  0x45   :  { %2282 = vmatprep.mubr.msk.f32.mxu0 %vm87_vm0, %v45_v61 }
  0x48   :  { %2283 = vmatmul.mubr.msk.f32.gmra.mrb[28].mxu0 %vm87_vm0, %v46_v62 }
  0x49   :  { %2285 = vmatprep.mubr.msk.f32.mxu0 %vm87_vm0, %v47_v63 }
  0x4c   :  { %2286 = vmatmul.mubr.msk.f32.gmra.mrb[30].mxu0 %vm87_vm0, %v48_v0 }
  0x4d   :  { %2288 = vmatprep.mubr.msk.f32.mxu0 %vm87_vm0, %v49_v1 }
  0x50   :  { %2289 = vmatmul.mubr.msk.f32.gmra.mrb[32].mxu0 %vm87_vm0, %v50_v2 }
  0x51   :  { %2291 = vmatprep.mubr.msk.f32.mxu0 %vm87_vm0, %v51_v3 }
  0x54   :  { %2292 = vmatmul.mubr.msk.f32.gmra.mrb[34].mxu0 %vm87_vm0, %v52_v4 }
  0x55   :  { %2294 = vmatprep.mubr.msk.f32.mxu0 %vm87_vm0, %v53_v5 }
  0x58   :  { %2295 = vmatmul.mubr.msk.f32.gmra.mrb[36].mxu0 %vm87_vm0, %v54_v6 }
  0x59   :  { %2297 = vmatprep.mubr.msk.f32.mxu0 %vm87_vm0, %v55_v7 }
  0x5c   :  { %2298 = vmatmul.mubr.msk.f32.gmra.mrb[38].mxu0 %vm87_vm0, %v56_v8 }
  0x5d   :  { %2300 = vmatprep.mubr.msk.f32.mxu0 %vm87_vm0, %v57_v9 }
  0x60   :  { %2301 = vmatmul.mubr.msk.f32.gmra.mrb[40].mxu0 %vm87_vm0, %v58_v10 }
  0x61   :  { %2303 = vmatprep.mubr.msk.f32.mxu0 %vm87_vm0, %v59_v11 }
  0x64   :  { %2304 = vmatmul.mubr.msk.f32.gmra.mrb[42].mxu0 %vm87_vm0, %v60_v12 }
  0x65   :  { %2306 = vmatprep.mubr.msk.f32.mxu0 %vm87_vm0, %v61_v13 }
  0x68   :  { %2307 = vmatmul.mubr.msk.f32.gmra.mrb[44].mxu0 %vm87_vm0, %v62_v14 }
  0x69   :  { %2309 = vmatprep.mubr.msk.f32.mxu0 %vm87_vm0, %v63_v15 }
  0x6c   :  { %2310 = vmatmul.mubr.msk.f32.gmra.mrb[46].mxu0 %vm87_vm0, %v64_v16 }
  0x6d   :  { %2312 = vmatprep.mubr.msk.f32.mxu0 %vm87_vm0, %v65_v17 }
  0x70   :  { %2313 = vmatmul.mubr.msk.f32.gmra.mrb[48].mxu0 %vm87_vm0, %v66_v18 }
  0x71   :  { %2315 = vmatprep.mubr.msk.f32.mxu0 %vm87_vm0, %v67_v19 }
  0x74   :  { %2316 = vmatmul.mubr.msk.f32.gmra.mrb[50].mxu0 %vm87_vm0, %v68_v20 }
  0x75   :  { %2318 = vmatprep.mubr.msk.f32.mxu0 %vm87_vm0, %v69_v21 }
  0x78   :  { %2319 = vmatmul.mubr.msk.f32.gmra.mrb[52].mxu0 %vm87_vm0, %v70_v22 }
  0x79   :  { %2321 = vmatprep.mubr.msk.f32.mxu0 %vm87_vm0, %v71_v23 }
  0x7c   :  { %2322 = vmatmul.mubr.msk.f32.gmra.mrb[54].mxu0 %vm87_vm0, %v72_v24 }
  0x7d   :  { %2324 = vmatprep.mubr.msk.f32.mxu0 %vm87_vm0, %v73_v25 }
  0x80   :  { %2325 = vmatmul.mubr.msk.f32.gmra.mrb[56].mxu0 %vm87_vm0, %v74_v26 }
  0x81   :  { %2327 = vmatprep.mubr.msk.f32.mxu0 %vm87_vm0, %v75_v27 }
  0x84   :  { %2328 = vmatmul.mubr.msk.f32.gmra.mrb[58].mxu0 %vm87_vm0, %v76_v28 }
  0x85   :  { %2330 = vmatprep.mubr.msk.f32.mxu0 %vm87_vm0, %v77_v29 }
  0x88   :  { %2331 = vmatmul.mubr.msk.f32.gmra.mrb[60].mxu0 %vm87_vm0, %v78_v30 }
  0x89   :  { %2333 = vmatprep.mubr.msk.f32.mxu0 %vm87_vm0, %v79_v31 }
  0x8c   :  { %2334 = vmatmul.mubr.msk.f32.gmra.mrb[62].mxu0 %vm87_vm0, %v80_v32 }
  0xe3   :  { %v2242_v33 = vpop.f32.mrb[0].mxu0 }
  0xe4   :  { %v346_v34 = vpop.f32.mrb[1].mxu0 }
  0xe5   :  { %v1890_v35 = vpack.c.bf16 %v2242_v33, %v346_v34  ;;  %2368 = vmatprep.mubr.f32.mxu0 %v346_v34 }
  0xe6   :  { %2369 = vmatmul.mubr.f32.vlgmr.msra.gmra.mrb[64].mxu0 %v2242_v33 }
  0xe7   :  { %1891 = vst [vmem:[#allocation2] sm:$0xff] %v1890_v35   ;;  %v2245_v36 = vpop.f32.mrb[2].mxu0 }
  0xe8   :  { %v356_v37 = vpop.f32.mrb[3].mxu0 }
  0xe9   :  { %v1895_v38 = vpack.c.bf16 %v2245_v36, %v356_v37  ;;  %2371 = vmatprep.mubr.f32.mxu0 %v356_v37 }
  0xea   :  { %2372 = vmatmul.mubr.f32.gmra.mrb[66].mxu0 %v2245_v36 }
  0xeb   :  { %2047 = vst [vmem:[#allocation2 + $0x8] sm:$0xff] %v1895_v38   ;;  %v2248_v39 = vpop.f32.mrb[4].mxu0 }
  0xec   :  { %v366_v40 = vpop.f32.mrb[5].mxu0 }
  0xed   :  { %v1900_v41 = vpack.c.bf16 %v2248_v39, %v366_v40  ;;  %2374 = vmatprep.mubr.f32.mxu1 %v366_v40 }
  0xee   :  { %2375 = vmatmul.mubr.f32.vlgmr.msra.gmra.mrb[0].mxu1 %v2248_v39 }
  0xef   :  { %2048 = vst [vmem:[#allocation2 + $0x10] sm:$0xff] %v1900_v41   ;;  %v2251_v42 = vpop.f32.mrb[6].mxu0 }
  0xf0   :  { %v376_v43 = vpop.f32.mrb[7].mxu0 }
  0xf1   :  { %v1905_v44 = vpack.c.bf16 %v2251_v42, %v376_v43  ;;  %2377 = vmatprep.mubr.f32.mxu1 %v376_v43 }
  0xf2   :  { %2378 = vmatmul.mubr.f32.gmra.mrb[2].mxu1 %v2251_v42 }
  0xf3   :  { %2049 = vst [vmem:[#allocation2 + $0x18] sm:$0xff] %v1905_v44   ;;  %v2254_v45 = vpop.f32.mrb[8].mxu0 }
  0xf4   :  { %v386_v46 = vpop.f32.mrb[9].mxu0 }
  0xf5   :  { %v1910_v47 = vpack.c.bf16 %v2254_v45, %v386_v46  ;;  %2380 = vmatprep.mubr.f32.mxu1 %v386_v46 }
  0xf6   :  { %2381 = vmatmul.mubr.f32.gmra.mrb[4].mxu1 %v2254_v45 }
  0xf7   :  { %2050 = vst [vmem:[#allocation2 + $0x20] sm:$0xff] %v1910_v47   ;;  %v2257_v48 = vpop.f32.mrb[10].mxu0 }
  0xf8   :  { %v396_v49 = vpop.f32.mrb[11].mxu0 }
  0xf9   :  { %v1915_v50 = vpack.c.bf16 %v2257_v48, %v396_v49  ;;  %2383 = vmatprep.mubr.f32.mxu1 %v396_v49 }
  0xfa   :  { %2384 = vmatmul.mubr.f32.gmra.mrb[6].mxu1 %v2257_v48 }
  0xfb   :  { %2051 = vst [vmem:[#allocation2 + $0x28] sm:$0xff] %v1915_v50   ;;  %v2260_v51 = vpop.f32.mrb[12].mxu0 }
  0xfc   :  { %v406_v52 = vpop.f32.mrb[13].mxu0 }
  0xfd   :  { %v1920_v53 = vpack.c.bf16 %v2260_v51, %v406_v52  ;;  %2386 = vmatprep.mubr.f32.mxu1 %v406_v52 }
  0xfe   :  { %2387 = vmatmul.mubr.f32.gmra.mrb[8].mxu1 %v2260_v51 }
  0xff   :  { %2052 = vst [vmem:[#allocation2 + $0x30] sm:$0xff] %v1920_v53   ;;  %v2263_v54 = vpop.f32.mrb[14].mxu0 }
 0x100   :  { %v416_v55 = vpop.f32.mrb[15].mxu0 }
 0x101   :  { %v1925_v56 = vpack.c.bf16 %v2263_v54, %v416_v55  ;;  %2389 = vmatprep.mubr.f32.mxu1 %v416_v55 }
 0x102   :  { %2390 = vmatmul.mubr.f32.gmra.mrb[10].mxu1 %v2263_v54 }
 0x103   :  { %2053 = vst [vmem:[#allocation2 + $0x38] sm:$0xff] %v1925_v56   ;;  %v2266_v57 = vpop.f32.mrb[16].mxu0 }
 0x104   :  { %v426_v58 = vpop.f32.mrb[17].mxu0 }
 0x105   :  { %v1930_v59 = vpack.c.bf16 %v2266_v57, %v426_v58  ;;  %2392 = vmatprep.mubr.f32.mxu1 %v426_v58 }
 0x106   :  { %2393 = vmatmul.mubr.f32.gmra.mrb[12].mxu1 %v2266_v57 }
 0x107   :  { %2054 = vst [vmem:[#allocation2 + $0x40] sm:$0xff] %v1930_v59   ;;  %v2269_v60 = vpop.f32.mrb[18].mxu0 }
 0x108   :  { %v436_v61 = vpop.f32.mrb[19].mxu0 }
 0x109   :  { %v1935_v62 = vpack.c.bf16 %v2269_v60, %v436_v61  ;;  %2395 = vmatprep.mubr.f32.mxu1 %v436_v61 }
 0x10a   :  { %2396 = vmatmul.mubr.f32.gmra.mrb[14].mxu1 %v2269_v60 }
 0x10b   :  { %2055 = vst [vmem:[#allocation2 + $0x48] sm:$0xff] %v1935_v62   ;;  %v2272_v63 = vpop.f32.mrb[20].mxu0 }
 0x10c   :  { %v446_v0 = vpop.f32.mrb[21].mxu0 }
 0x10d   :  { %v1940_v1 = vpack.c.bf16 %v2272_v63, %v446_v0  ;;  %2398 = vmatprep.mubr.f32.mxu1 %v446_v0 }
 0x10e   :  { %2399 = vmatmul.mubr.f32.gmra.mrb[16].mxu1 %v2272_v63 }
 0x10f   :  { %2056 = vst [vmem:[#allocation2 + $0x50] sm:$0xff] %v1940_v1   ;;  %v2275_v2 = vpop.f32.mrb[22].mxu0 }
 0x110   :  { %v456_v3 = vpop.f32.mrb[23].mxu0 }
 0x111   :  { %v1945_v4 = vpack.c.bf16 %v2275_v2, %v456_v3  ;;  %2401 = vmatprep.mubr.f32.mxu1 %v456_v3 }
 0x112   :  { %2402 = vmatmul.mubr.f32.gmra.mrb[18].mxu1 %v2275_v2 }
 0x113   :  { %2057 = vst [vmem:[#allocation2 + $0x58] sm:$0xff] %v1945_v4   ;;  %v2278_v5 = vpop.f32.mrb[24].mxu0 }
 0x114   :  { %v466_v6 = vpop.f32.mrb[25].mxu0 }
 0x115   :  { %v1950_v7 = vpack.c.bf16 %v2278_v5, %v466_v6  ;;  %2404 = vmatprep.mubr.f32.mxu1 %v466_v6 }
 0x116   :  { %2405 = vmatmul.mubr.f32.gmra.mrb[20].mxu1 %v2278_v5 }
 0x117   :  { %2058 = vst [vmem:[#allocation2 + $0x60] sm:$0xff] %v1950_v7   ;;  %v2281_v8 = vpop.f32.mrb[26].mxu0 }
 0x118   :  { %v476_v9 = vpop.f32.mrb[27].mxu0 }
 0x119   :  { %v1955_v10 = vpack.c.bf16 %v2281_v8, %v476_v9  ;;  %2407 = vmatprep.mubr.f32.mxu1 %v476_v9 }
 0x11a   :  { %2408 = vmatmul.mubr.f32.gmra.mrb[22].mxu1 %v2281_v8 }
 0x11b   :  { %2059 = vst [vmem:[#allocation2 + $0x68] sm:$0xff] %v1955_v10   ;;  %v2284_v11 = vpop.f32.mrb[28].mxu0 }
 0x11c   :  { %v486_v12 = vpop.f32.mrb[29].mxu0 }
 0x11d   :  { %v1960_v13 = vpack.c.bf16 %v2284_v11, %v486_v12  ;;  %2410 = vmatprep.mubr.f32.mxu1 %v486_v12 }
 0x11e   :  { %2411 = vmatmul.mubr.f32.gmra.mrb[24].mxu1 %v2284_v11 }
 0x11f   :  { %2060 = vst [vmem:[#allocation2 + $0x70] sm:$0xff] %v1960_v13   ;;  %v2287_v14 = vpop.f32.mrb[30].mxu0 }
 0x120   :  { %v496_v15 = vpop.f32.mrb[31].mxu0 }
 0x121   :  { %v1965_v16 = vpack.c.bf16 %v2287_v14, %v496_v15  ;;  %2413 = vmatprep.mubr.f32.mxu1 %v496_v15 }
 0x122   :  { %2414 = vmatmul.mubr.f32.gmra.mrb[26].mxu1 %v2287_v14 }
 0x123   :  { %2061 = vst [vmem:[#allocation2 + $0x78] sm:$0xff] %v1965_v16   ;;  %v2290_v17 = vpop.f32.mrb[32].mxu0 }
 0x124   :  { %v506_v18 = vpop.f32.mrb[33].mxu0 }
 0x125   :  { %v1970_v19 = vpack.c.bf16 %v2290_v17, %v506_v18  ;;  %2416 = vmatprep.mubr.f32.mxu1 %v506_v18 }
 0x126   :  { %2417 = vmatmul.mubr.f32.gmra.mrb[28].mxu1 %v2290_v17 }
 0x127   :  { %2062 = vst [vmem:[#allocation2 + $0x80] sm:$0xff] %v1970_v19   ;;  %v2293_v20 = vpop.f32.mrb[34].mxu0 }
 0x128   :  { %v516_v21 = vpop.f32.mrb[35].mxu0 }
 0x129   :  { %v1975_v22 = vpack.c.bf16 %v2293_v20, %v516_v21  ;;  %2419 = vmatprep.mubr.f32.mxu1 %v516_v21 }
 0x12a   :  { %2420 = vmatmul.mubr.f32.gmra.mrb[30].mxu1 %v2293_v20 }
 0x12b   :  { %2063 = vst [vmem:[#allocation2 + $0x88] sm:$0xff] %v1975_v22   ;;  %v2296_v23 = vpop.f32.mrb[36].mxu0 }
 0x12c   :  { %v526_v24 = vpop.f32.mrb[37].mxu0 }
 0x12d   :  { %v1980_v25 = vpack.c.bf16 %v2296_v23, %v526_v24  ;;  %2422 = vmatprep.mubr.f32.mxu1 %v526_v24 }
 0x12e   :  { %2423 = vmatmul.mubr.f32.gmra.mrb[32].mxu1 %v2296_v23 }
 0x12f   :  { %2064 = vst [vmem:[#allocation2 + $0x90] sm:$0xff] %v1980_v25   ;;  %v2299_v26 = vpop.f32.mrb[38].mxu0 }
 0x130   :  { %v536_v27 = vpop.f32.mrb[39].mxu0 }
 0x131   :  { %v1985_v28 = vpack.c.bf16 %v2299_v26, %v536_v27  ;;  %2425 = vmatprep.mubr.f32.mxu1 %v536_v27 }
 0x132   :  { %2426 = vmatmul.mubr.f32.gmra.mrb[34].mxu1 %v2299_v26 }
 0x133   :  { %2065 = vst [vmem:[#allocation2 + $0x98] sm:$0xff] %v1985_v28   ;;  %v2302_v29 = vpop.f32.mrb[40].mxu0 }
 0x134   :  { %v546_v30 = vpop.f32.mrb[41].mxu0 }
 0x135   :  { %v1990_v31 = vpack.c.bf16 %v2302_v29, %v546_v30  ;;  %2428 = vmatprep.mubr.f32.mxu1 %v546_v30 }
 0x136   :  { %2429 = vmatmul.mubr.f32.gmra.mrb[36].mxu1 %v2302_v29 }
 0x137   :  { %2066 = vst [vmem:[#allocation2 + $0xa0] sm:$0xff] %v1990_v31   ;;  %v2305_v32 = vpop.f32.mrb[42].mxu0 }
 0x138   :  { %v556_v33 = vpop.f32.mrb[43].mxu0 }
 0x139   :  { %v1995_v34 = vpack.c.bf16 %v2305_v32, %v556_v33  ;;  %2431 = vmatprep.mubr.f32.mxu1 %v556_v33 }
 0x13a   :  { %2432 = vmatmul.mubr.f32.gmra.mrb[38].mxu1 %v2305_v32 }
 0x13b   :  { %2067 = vst [vmem:[#allocation2 + $0xa8] sm:$0xff] %v1995_v34   ;;  %v2308_v35 = vpop.f32.mrb[44].mxu0 }
 0x13c   :  { %v566_v36 = vpop.f32.mrb[45].mxu0 }
 0x13d   :  { %v2000_v37 = vpack.c.bf16 %v2308_v35, %v566_v36  ;;  %2434 = vmatprep.mubr.f32.mxu1 %v566_v36 }
 0x13e   :  { %2435 = vmatmul.mubr.f32.gmra.mrb[40].mxu1 %v2308_v35 }
 0x13f   :  { %2068 = vst [vmem:[#allocation2 + $0xb0] sm:$0xff] %v2000_v37   ;;  %v2311_v38 = vpop.f32.mrb[46].mxu0 }
 0x140   :  { %v576_v39 = vpop.f32.mrb[47].mxu0 }
 0x141   :  { %v2005_v40 = vpack.c.bf16 %v2311_v38, %v576_v39  ;;  %2437 = vmatprep.mubr.f32.mxu1 %v576_v39 }
 0x142   :  { %2438 = vmatmul.mubr.f32.gmra.mrb[42].mxu1 %v2311_v38 }
 0x143   :  { %2069 = vst [vmem:[#allocation2 + $0xb8] sm:$0xff] %v2005_v40   ;;  %v2314_v41 = vpop.f32.mrb[48].mxu0 }
 0x144   :  { %v586_v42 = vpop.f32.mrb[49].mxu0 }
 0x145   :  { %v2010_v43 = vpack.c.bf16 %v2314_v41, %v586_v42  ;;  %2440 = vmatprep.mubr.f32.mxu1 %v586_v42 }
 0x146   :  { %2441 = vmatmul.mubr.f32.gmra.mrb[44].mxu1 %v2314_v41 }
 0x147   :  { %2070 = vst [vmem:[#allocation2 + $0xc0] sm:$0xff] %v2010_v43   ;;  %v2317_v44 = vpop.f32.mrb[50].mxu0 }
 0x148   :  { %v596_v45 = vpop.f32.mrb[51].mxu0 }
 0x149   :  { %v2015_v46 = vpack.c.bf16 %v2317_v44, %v596_v45  ;;  %2443 = vmatprep.mubr.f32.mxu1 %v596_v45 }
 0x14a   :  { %2444 = vmatmul.mubr.f32.gmra.mrb[46].mxu1 %v2317_v44 }
 0x14b   :  { %2071 = vst [vmem:[#allocation2 + $0xc8] sm:$0xff] %v2015_v46   ;;  %v2320_v47 = vpop.f32.mrb[52].mxu0 }
 0x14c   :  { %v606_v48 = vpop.f32.mrb[53].mxu0 }
 0x14d   :  { %v2020_v49 = vpack.c.bf16 %v2320_v47, %v606_v48  ;;  %2446 = vmatprep.mubr.f32.mxu1 %v606_v48 }
 0x14e   :  { %2447 = vmatmul.mubr.f32.gmra.mrb[48].mxu1 %v2320_v47 }
 0x14f   :  { %2072 = vst [vmem:[#allocation2 + $0xd0] sm:$0xff] %v2020_v49   ;;  %v2323_v50 = vpop.f32.mrb[54].mxu0 }
 0x150   :  { %v616_v51 = vpop.f32.mrb[55].mxu0 }
 0x151   :  { %v2025_v52 = vpack.c.bf16 %v2323_v50, %v616_v51  ;;  %2449 = vmatprep.mubr.f32.mxu1 %v616_v51 }
 0x152   :  { %2450 = vmatmul.mubr.f32.gmra.mrb[50].mxu1 %v2323_v50 }
 0x153   :  { %2073 = vst [vmem:[#allocation2 + $0xd8] sm:$0xff] %v2025_v52   ;;  %v2326_v53 = vpop.f32.mrb[56].mxu0 }
 0x154   :  { %v626_v54 = vpop.f32.mrb[57].mxu0 }
 0x155   :  { %v2030_v55 = vpack.c.bf16 %v2326_v53, %v626_v54  ;;  %2452 = vmatprep.mubr.f32.mxu1 %v626_v54 }
 0x156   :  { %2453 = vmatmul.mubr.f32.gmra.mrb[52].mxu1 %v2326_v53 }
 0x157   :  { %2074 = vst [vmem:[#allocation2 + $0xe0] sm:$0xff] %v2030_v55   ;;  %v2329_v56 = vpop.f32.mrb[58].mxu0 }
 0x158   :  { %v636_v57 = vpop.f32.mrb[59].mxu0 }
 0x159   :  { %v2035_v58 = vpack.c.bf16 %v2329_v56, %v636_v57  ;;  %2455 = vmatprep.mubr.f32.mxu1 %v636_v57 }
 0x15a   :  { %2456 = vmatmul.mubr.f32.gmra.mrb[54].mxu1 %v2329_v56 }
 0x15b   :  { %2075 = vst [vmem:[#allocation2 + $0xe8] sm:$0xff] %v2035_v58   ;;  %v2332_v59 = vpop.f32.mrb[60].mxu0 }
 0x15c   :  { %v646_v60 = vpop.f32.mrb[61].mxu0 }
 0x15d   :  { %v2040_v61 = vpack.c.bf16 %v2332_v59, %v646_v60  ;;  %2458 = vmatprep.mubr.f32.mxu1 %v646_v60 }
 0x15e   :  { %2459 = vmatmul.mubr.f32.gmra.mrb[56].mxu1 %v2332_v59 }
 0x15f   :  { %2076 = vst [vmem:[#allocation2 + $0xf0] sm:$0xff] %v2040_v61   ;;  %v2335_v62 = vpop.f32.mrb[62].mxu0 }
 0x160   :  { %v656_v63 = vpop.f32.mrb[63].mxu0 }
 0x161   :  { %v2045_v0 = vpack.c.bf16 %v2335_v62, %v656_v63  ;;  %2461 = vmatprep.mubr.f32.mxu1 %v656_v63 }
 0x162   :  { %2462 = vmatmul.mubr.f32.gmra.mrb[58].mxu1 %v2335_v62 }
 0x163   :  { %2077 = vst [vmem:[#allocation2 + $0xf8] sm:$0xff] %v2045_v0  }
 0x1b9   :  { %v2370_v1 = vpop.f32.mrb[64].mxu0 }
 0x1ba   :  { %1068 = vst.msk [vmem:[#allocation4 + $0x8] sm:$0xff] %vm1066_vm1, %v2370_v1  ;;  %v747_v2 = vpop.f32.mrb[65].mxu0 }
 0x1bb   :  { %1067 = vst.msk [vmem:[#allocation4] sm:$0xff] %vm1066_vm1, %v747_v2 }
 0x1bd   :  { %v2373_v3 = vpop.f32.mrb[66].mxu0 }
 0x1be   :  { %1070 = vst.msk [vmem:[#allocation4 + $0x18] sm:$0xff] %vm1066_vm1, %v2373_v3  ;;  %v757_v4 = vpop.f32.mrb[67].mxu0 }
 0x1bf   :  { %1069 = vst.msk [vmem:[#allocation4 + $0x10] sm:$0xff] %vm1066_vm1, %v757_v4 }
 0x1c1   :  { %v2376_v5 = vpop.f32.mrb[0].mxu1 }
 0x1c2   :  { %1072 = vst.msk [vmem:[#allocation4 + $0x28] sm:$0xff] %vm1066_vm1, %v2376_v5  ;;  %v767_v6 = vpop.f32.mrb[1].mxu1 }
 0x1c3   :  { %1071 = vst.msk [vmem:[#allocation4 + $0x20] sm:$0xff] %vm1066_vm1, %v767_v6 }
 0x1c5   :  { %v2379_v7 = vpop.f32.mrb[2].mxu1 }
 0x1c6   :  { %1074 = vst.msk [vmem:[#allocation4 + $0x38] sm:$0xff] %vm1066_vm1, %v2379_v7  ;;  %v777_v8 = vpop.f32.mrb[3].mxu1 }
 0x1c7   :  { %1073 = vst.msk [vmem:[#allocation4 + $0x30] sm:$0xff] %vm1066_vm1, %v777_v8 }
 0x1c9   :  { %v2382_v9 = vpop.f32.mrb[4].mxu1 }
 0x1ca   :  { %1076 = vst.msk [vmem:[#allocation4 + $0x48] sm:$0xff] %vm1066_vm1, %v2382_v9  ;;  %v787_v10 = vpop.f32.mrb[5].mxu1 }
 0x1cb   :  { %1075 = vst.msk [vmem:[#allocation4 + $0x40] sm:$0xff] %vm1066_vm1, %v787_v10 }
 0x1cd   :  { %v2385_v11 = vpop.f32.mrb[6].mxu1 }
 0x1ce   :  { %1078 = vst.msk [vmem:[#allocation4 + $0x58] sm:$0xff] %vm1066_vm1, %v2385_v11  ;;  %v797_v12 = vpop.f32.mrb[7].mxu1 }
 0x1cf   :  { %1077 = vst.msk [vmem:[#allocation4 + $0x50] sm:$0xff] %vm1066_vm1, %v797_v12 }
 0x1d1   :  { %v2388_v13 = vpop.f32.mrb[8].mxu1 }
 0x1d2   :  { %1080 = vst.msk [vmem:[#allocation4 + $0x68] sm:$0xff] %vm1066_vm1, %v2388_v13  ;;  %v807_v14 = vpop.f32.mrb[9].mxu1 }
 0x1d3   :  { %1079 = vst.msk [vmem:[#allocation4 + $0x60] sm:$0xff] %vm1066_vm1, %v807_v14 }
 0x1d5   :  { %v2391_v15 = vpop.f32.mrb[10].mxu1 }
 0x1d6   :  { %1082 = vst.msk [vmem:[#allocation4 + $0x78] sm:$0xff] %vm1066_vm1, %v2391_v15  ;;  %v817_v16 = vpop.f32.mrb[11].mxu1 }
 0x1d7   :  { %1081 = vst.msk [vmem:[#allocation4 + $0x70] sm:$0xff] %vm1066_vm1, %v817_v16 }
 0x1d9   :  { %v2394_v17 = vpop.f32.mrb[12].mxu1 }
 0x1da   :  { %1084 = vst.msk [vmem:[#allocation4 + $0x88] sm:$0xff] %vm1066_vm1, %v2394_v17  ;;  %v827_v18 = vpop.f32.mrb[13].mxu1 }
 0x1db   :  { %1083 = vst.msk [vmem:[#allocation4 + $0x80] sm:$0xff] %vm1066_vm1, %v827_v18 }
 0x1dd   :  { %v2397_v19 = vpop.f32.mrb[14].mxu1 }
 0x1de   :  { %1086 = vst.msk [vmem:[#allocation4 + $0x98] sm:$0xff] %vm1066_vm1, %v2397_v19  ;;  %v837_v20 = vpop.f32.mrb[15].mxu1 }
 0x1df   :  { %1085 = vst.msk [vmem:[#allocation4 + $0x90] sm:$0xff] %vm1066_vm1, %v837_v20 }
 0x1e1   :  { %v2400_v21 = vpop.f32.mrb[16].mxu1 }
 0x1e2   :  { %1088 = vst.msk [vmem:[#allocation4 + $0xa8] sm:$0xff] %vm1066_vm1, %v2400_v21  ;;  %v847_v22 = vpop.f32.mrb[17].mxu1 }
 0x1e3   :  { %1087 = vst.msk [vmem:[#allocation4 + $0xa0] sm:$0xff] %vm1066_vm1, %v847_v22 }
 0x1e5   :  { %v2403_v23 = vpop.f32.mrb[18].mxu1 }
 0x1e6   :  { %1090 = vst.msk [vmem:[#allocation4 + $0xb8] sm:$0xff] %vm1066_vm1, %v2403_v23  ;;  %v857_v24 = vpop.f32.mrb[19].mxu1 }
 0x1e7   :  { %1089 = vst.msk [vmem:[#allocation4 + $0xb0] sm:$0xff] %vm1066_vm1, %v857_v24 }
 0x1e9   :  { %v2406_v25 = vpop.f32.mrb[20].mxu1 }
 0x1ea   :  { %1092 = vst.msk [vmem:[#allocation4 + $0xc8] sm:$0xff] %vm1066_vm1, %v2406_v25  ;;  %v867_v26 = vpop.f32.mrb[21].mxu1 }
 0x1eb   :  { %1091 = vst.msk [vmem:[#allocation4 + $0xc0] sm:$0xff] %vm1066_vm1, %v867_v26 }
 0x1ed   :  { %v2409_v27 = vpop.f32.mrb[22].mxu1 }
 0x1ee   :  { %1094 = vst.msk [vmem:[#allocation4 + $0xd8] sm:$0xff] %vm1066_vm1, %v2409_v27  ;;  %v877_v28 = vpop.f32.mrb[23].mxu1 }
 0x1ef   :  { %1093 = vst.msk [vmem:[#allocation4 + $0xd0] sm:$0xff] %vm1066_vm1, %v877_v28 }
 0x1f1   :  { %v2412_v29 = vpop.f32.mrb[24].mxu1 }
 0x1f2   :  { %1096 = vst.msk [vmem:[#allocation4 + $0xe8] sm:$0xff] %vm1066_vm1, %v2412_v29  ;;  %v887_v30 = vpop.f32.mrb[25].mxu1 }
 0x1f3   :  { %1095 = vst.msk [vmem:[#allocation4 + $0xe0] sm:$0xff] %vm1066_vm1, %v887_v30 }
 0x1f5   :  { %v2415_v31 = vpop.f32.mrb[26].mxu1 }
 0x1f6   :  { %1098 = vst.msk [vmem:[#allocation4 + $0xf8] sm:$0xff] %vm1066_vm1, %v2415_v31  ;;  %v897_v32 = vpop.f32.mrb[27].mxu1 }
 0x1f7   :  { %1097 = vst.msk [vmem:[#allocation4 + $0xf0] sm:$0xff] %vm1066_vm1, %v897_v32 }
 0x1f9   :  { %v2418_v33 = vpop.f32.mrb[28].mxu1 }
 0x1fa   :  { %1100 = vst.msk [vmem:[#allocation4 + $0x108] sm:$0xff] %vm1066_vm1, %v2418_v33  ;;  %v907_v34 = vpop.f32.mrb[29].mxu1 }
 0x1fb   :  { %1099 = vst.msk [vmem:[#allocation4 + $0x100] sm:$0xff] %vm1066_vm1, %v907_v34 }
 0x1fd   :  { %v2421_v35 = vpop.f32.mrb[30].mxu1 }
 0x1fe   :  { %1102 = vst.msk [vmem:[#allocation4 + $0x118] sm:$0xff] %vm1066_vm1, %v2421_v35  ;;  %v917_v36 = vpop.f32.mrb[31].mxu1 }
 0x1ff   :  { %1101 = vst.msk [vmem:[#allocation4 + $0x110] sm:$0xff] %vm1066_vm1, %v917_v36 }
 0x201   :  { %v2424_v37 = vpop.f32.mrb[32].mxu1 }
 0x202   :  { %1104 = vst.msk [vmem:[#allocation4 + $0x128] sm:$0xff] %vm1066_vm1, %v2424_v37  ;;  %v927_v38 = vpop.f32.mrb[33].mxu1 }
 0x203   :  { %1103 = vst.msk [vmem:[#allocation4 + $0x120] sm:$0xff] %vm1066_vm1, %v927_v38 }
 0x205   :  { %v2427_v39 = vpop.f32.mrb[34].mxu1 }
 0x206   :  { %1106 = vst.msk [vmem:[#allocation4 + $0x138] sm:$0xff] %vm1066_vm1, %v2427_v39  ;;  %v937_v40 = vpop.f32.mrb[35].mxu1 }
 0x207   :  { %1105 = vst.msk [vmem:[#allocation4 + $0x130] sm:$0xff] %vm1066_vm1, %v937_v40 }
 0x209   :  { %v2430_v41 = vpop.f32.mrb[36].mxu1 }
 0x20a   :  { %1108 = vst.msk [vmem:[#allocation4 + $0x148] sm:$0xff] %vm1066_vm1, %v2430_v41  ;;  %v947_v42 = vpop.f32.mrb[37].mxu1 }
 0x20b   :  { %1107 = vst.msk [vmem:[#allocation4 + $0x140] sm:$0xff] %vm1066_vm1, %v947_v42 }
 0x20d   :  { %v2433_v43 = vpop.f32.mrb[38].mxu1 }
 0x20e   :  { %1110 = vst.msk [vmem:[#allocation4 + $0x158] sm:$0xff] %vm1066_vm1, %v2433_v43  ;;  %v957_v44 = vpop.f32.mrb[39].mxu1 }
 0x20f   :  { %1109 = vst.msk [vmem:[#allocation4 + $0x150] sm:$0xff] %vm1066_vm1, %v957_v44 }
 0x211   :  { %v2436_v45 = vpop.f32.mrb[40].mxu1 }
 0x212   :  { %1112 = vst.msk [vmem:[#allocation4 + $0x168] sm:$0xff] %vm1066_vm1, %v2436_v45  ;;  %v967_v46 = vpop.f32.mrb[41].mxu1 }
 0x213   :  { %1111 = vst.msk [vmem:[#allocation4 + $0x160] sm:$0xff] %vm1066_vm1, %v967_v46 }
 0x215   :  { %v2439_v47 = vpop.f32.mrb[42].mxu1 }
 0x216   :  { %1114 = vst.msk [vmem:[#allocation4 + $0x178] sm:$0xff] %vm1066_vm1, %v2439_v47  ;;  %v977_v48 = vpop.f32.mrb[43].mxu1 }
 0x217   :  { %1113 = vst.msk [vmem:[#allocation4 + $0x170] sm:$0xff] %vm1066_vm1, %v977_v48 }
 0x219   :  { %v2442_v49 = vpop.f32.mrb[44].mxu1 }
 0x21a   :  { %v987_v50 = vpop.f32.mrb[45].mxu1 }
 0x21d   :  { %v2445_v51 = vpop.f32.mrb[46].mxu1 }
 0x21e   :  { %v997_v52 = vpop.f32.mrb[47].mxu1 }
 0x221   :  { %v2448_v53 = vpop.f32.mrb[48].mxu1 }
 0x222   :  { %v1007_v54 = vpop.f32.mrb[49].mxu1 }
 0x225   :  { %v2451_v55 = vpop.f32.mrb[50].mxu1 }
 0x226   :  { %v1017_v56 = vpop.f32.mrb[51].mxu1 }
 0x229   :  { %v2454_v57 = vpop.f32.mrb[52].mxu1 }
 0x22a   :  { %v1027_v58 = vpop.f32.mrb[53].mxu1 }
 0x22d   :  { %v2457_v59 = vpop.f32.mrb[54].mxu1 }
 0x22e   :  { %v1037_v60 = vpop.f32.mrb[55].mxu1 }
 0x231   :  { %v2460_v61 = vpop.f32.mrb[56].mxu1 }
 0x232   :  { %v1047_v62 = vpop.f32.mrb[57].mxu1 }
 0x235   :  { %v2463_v63 = vpop.f32.mrb[58].mxu1 }
 0x236   :  { %v1057_v0 = vpop.f32.mrb[59].mxu1 }
 0x237   :  { %1455 = vsyncadd [#allocation3], 1024  ;;  %v1586_v1 = vld [vmem:[#allocation4] sm:$0xff]  ;;  %v1588_v2 = vld [vmem:[#allocation4 + $0x8] sm:$0xff]  ;;  %s2551_s0 = smov [#allocation2]  }
 0x238   :  { %s1456_s21 = sshll.u32 %s2551_s0, 4  ;;  %1587 = vst [vmem:[%s3109_s4] sm:$0xff] %v1586_v1  ;;  %1589 = vst [vmem:[%s3109_s4 + $0x8] sm:$0xff] %v1588_v2  ;;  %v1590_v3 = vld [vmem:[#allocation4 + $0x10] sm:$0xff]  ;;  %v1592_v4 = vld [vmem:[#allocation4 + $0x18] sm:$0xff]  ;;  %s1457_s21 = int_to_ptr.vmem [resolvable:$true] %s1456_s21 }
 0x239   :  { %v1594_v5 = vld [vmem:[#allocation4 + $0x20] sm:$0xff]  ;;  %1591 = vst [vmem:[%s3109_s4 + $0x10] sm:$0xff] %v1590_v3  ;;  %1593 = vst [vmem:[%s3109_s4 + $0x18] sm:$0xff] %v1592_v4  ;;  %v1596_v6 = vld [vmem:[#allocation4 + $0x28] sm:$0xff]  ;;  %s2527_s6 = scalar_lea.vmem %s1457_s21, 3072  ;;  %s2531_s1 = scalar_lea.vmem %s1457_s21, 4096 }
 0x23a   :  { %1595 = vst [vmem:[%s3109_s4 + $0x20] sm:$0xff] %v1594_v5  ;;  %v1598_v7 = vld [vmem:[#allocation4 + $0x30] sm:$0xff]  ;;  %v1600_v8 = vld [vmem:[#allocation4 + $0x38] sm:$0xff]  ;;  %p2528_p0 = scmp.ne.s32.totalorder %s1457_s21, %s2527_s6  ;;  %p2532_p1 = scmp.lt.s32.totalorder %s1457_s21, %s1457_s21 }
 0x23b   :  { %p2533_p2 = scmp.lt.s32.totalorder %s2531_s1, %s2527_s6 }
 0x23d   :  { %p2534_p3 = por %p2533_p2, %p2532_p1 }
 0x23f   :  { %p2535_p4 = pnand %p2534_p3, %p2528_p0 }
 0x241   :  { %2538 = shalt.err (!%p2535_p4)
}
 0x242   :  { %s2539_s9 = scalar_lea.hbm %s3108_s3, 3072 }
 0x243   :  { %p2540_p5 = scmp.ne.s32.totalorder %s3108_s3, %s2539_s9  ;;  %p2543_p6 = scmp.lt.u32.totalorder %s2539_s9, %s3108_s3 }
 0x245   :  { %p2545_p7 = pnand %p2543_p6, %p2540_p5 }
 0x247   :  { %2548 = shalt.err (!%p2545_p7)
}
 0x248   :  { %s2552_s14 = smov 64   ;;  %s2553_s15 = smov 4   ;;  %1597 = vst [vmem:[%s3109_s4 + $0x28] sm:$0xff] %v1596_v6  ;;  %1599 = vst [vmem:[%s3109_s4 + $0x30] sm:$0xff] %v1598_v7  ;;  %v1602_v9 = vld [vmem:[#allocation4 + $0x40] sm:$0xff]  ;;  %v1604_v10 = vld [vmem:[#allocation4 + $0x48] sm:$0xff] }
 0x249   :  { %1462 = dma.vmem_to_hbm [thread:$0]  %s1457_s21, 3072, %s3108_s3, [#allocation3], %s2552_s14, %s2552_s14, %s2553_s15   ;;  %v1606_v11 = vld [vmem:[#allocation4 + $0x50] sm:$0xff]  ;;  %v1608_v12 = vld [vmem:[#allocation4 + $0x58] sm:$0xff]  ;;  %v1610_v13 = vld [vmem:[#allocation4 + $0x60] sm:$0xff] }
 0x24a   :  { %1601 = vst [vmem:[%s3109_s4 + $0x38] sm:$0xff] %v1600_v8  ;;  %1603 = vst [vmem:[%s3109_s4 + $0x40] sm:$0xff] %v1602_v9  ;;  %v1612_v14 = vld [vmem:[#allocation4 + $0x68] sm:$0xff]  ;;  %v1614_v15 = vld [vmem:[#allocation4 + $0x70] sm:$0xff] }
 0x24b   :  { %1605 = vst [vmem:[%s3109_s4 + $0x48] sm:$0xff] %v1604_v10  ;;  %1607 = vst [vmem:[%s3109_s4 + $0x50] sm:$0xff] %v1606_v11  ;;  %v1616_v16 = vld [vmem:[#allocation4 + $0x78] sm:$0xff]  ;;  %v1618_v17 = vld [vmem:[#allocation4 + $0x80] sm:$0xff] }
 0x24c   :  { %1609 = vst [vmem:[%s3109_s4 + $0x58] sm:$0xff] %v1608_v12  ;;  %1611 = vst [vmem:[%s3109_s4 + $0x60] sm:$0xff] %v1610_v13  ;;  %v1620_v18 = vld [vmem:[#allocation4 + $0x88] sm:$0xff]  ;;  %v1622_v19 = vld [vmem:[#allocation4 + $0x90] sm:$0xff] }
 0x24d   :  { %1613 = vst [vmem:[%s3109_s4 + $0x68] sm:$0xff] %v1612_v14  ;;  %1615 = vst [vmem:[%s3109_s4 + $0x70] sm:$0xff] %v1614_v15  ;;  %v1624_v20 = vld [vmem:[#allocation4 + $0x98] sm:$0xff]  ;;  %v1626_v21 = vld [vmem:[#allocation4 + $0xa0] sm:$0xff] }
 0x24e   :  { %1617 = vst [vmem:[%s3109_s4 + $0x78] sm:$0xff] %v1616_v16  ;;  %1619 = vst [vmem:[%s3109_s4 + $0x80] sm:$0xff] %v1618_v17  ;;  %v1628_v22 = vld [vmem:[#allocation4 + $0xa8] sm:$0xff]  ;;  %v1630_v23 = vld [vmem:[#allocation4 + $0xb0] sm:$0xff] }
 0x24f   :  { %1621 = vst [vmem:[%s3109_s4 + $0x88] sm:$0xff] %v1620_v18  ;;  %1623 = vst [vmem:[%s3109_s4 + $0x90] sm:$0xff] %v1622_v19  ;;  %v1632_v24 = vld [vmem:[#allocation4 + $0xb8] sm:$0xff]  ;;  %v1634_v25 = vld [vmem:[#allocation4 + $0xc0] sm:$0xff] }
 0x250   :  { %1625 = vst [vmem:[%s3109_s4 + $0x98] sm:$0xff] %v1624_v20  ;;  %1627 = vst [vmem:[%s3109_s4 + $0xa0] sm:$0xff] %v1626_v21  ;;  %v1636_v26 = vld [vmem:[#allocation4 + $0xc8] sm:$0xff]  ;;  %v1638_v27 = vld [vmem:[#allocation4 + $0xd0] sm:$0xff] }
 0x251   :  { %1629 = vst [vmem:[%s3109_s4 + $0xa8] sm:$0xff] %v1628_v22  ;;  %1631 = vst [vmem:[%s3109_s4 + $0xb0] sm:$0xff] %v1630_v23  ;;  %v1640_v28 = vld [vmem:[#allocation4 + $0xd8] sm:$0xff]  ;;  %v1642_v29 = vld [vmem:[#allocation4 + $0xe0] sm:$0xff] }
 0x252   :  { %1633 = vst [vmem:[%s3109_s4 + $0xb8] sm:$0xff] %v1632_v24  ;;  %1635 = vst [vmem:[%s3109_s4 + $0xc0] sm:$0xff] %v1634_v25  ;;  %v1644_v30 = vld [vmem:[#allocation4 + $0xe8] sm:$0xff]  ;;  %v1646_v31 = vld [vmem:[#allocation4 + $0xf0] sm:$0xff] }
 0x253   :  { %1637 = vst [vmem:[%s3109_s4 + $0xc8] sm:$0xff] %v1636_v26  ;;  %1639 = vst [vmem:[%s3109_s4 + $0xd0] sm:$0xff] %v1638_v27  ;;  %v1648_v32 = vld [vmem:[#allocation4 + $0xf8] sm:$0xff]  ;;  %v1650_v33 = vld [vmem:[#allocation4 + $0x100] sm:$0xff] }
 0x254   :  { %1641 = vst [vmem:[%s3109_s4 + $0xd8] sm:$0xff] %v1640_v28  ;;  %1643 = vst [vmem:[%s3109_s4 + $0xe0] sm:$0xff] %v1642_v29  ;;  %v1652_v34 = vld [vmem:[#allocation4 + $0x108] sm:$0xff]  ;;  %v1654_v35 = vld [vmem:[#allocation4 + $0x110] sm:$0xff] }
 0x255   :  { %1645 = vst [vmem:[%s3109_s4 + $0xe8] sm:$0xff] %v1644_v30  ;;  %1647 = vst [vmem:[%s3109_s4 + $0xf0] sm:$0xff] %v1646_v31  ;;  %v1656_v36 = vld [vmem:[#allocation4 + $0x118] sm:$0xff]  ;;  %v1658_v37 = vld [vmem:[#allocation4 + $0x120] sm:$0xff] }
 0x256   :  { %1649 = vst [vmem:[%s3109_s4 + $0xf8] sm:$0xff] %v1648_v32  ;;  %1651 = vst [vmem:[%s3109_s4 + $0x100] sm:$0xff] %v1650_v33  ;;  %v1660_v38 = vld [vmem:[#allocation4 + $0x128] sm:$0xff]  ;;  %v1662_v39 = vld [vmem:[#allocation4 + $0x130] sm:$0xff] }
 0x257   :  { %1653 = vst [vmem:[%s3109_s4 + $0x108] sm:$0xff] %v1652_v34  ;;  %1655 = vst [vmem:[%s3109_s4 + $0x110] sm:$0xff] %v1654_v35  ;;  %v1664_v40 = vld [vmem:[#allocation4 + $0x138] sm:$0xff]  ;;  %v1666_v41 = vld [vmem:[#allocation4 + $0x140] sm:$0xff] }
 0x258   :  { %1657 = vst [vmem:[%s3109_s4 + $0x118] sm:$0xff] %v1656_v36  ;;  %1659 = vst [vmem:[%s3109_s4 + $0x120] sm:$0xff] %v1658_v37  ;;  %v1668_v42 = vld [vmem:[#allocation4 + $0x148] sm:$0xff]  ;;  %v1670_v43 = vld [vmem:[#allocation4 + $0x150] sm:$0xff] }
 0x259   :  { %1661 = vst [vmem:[%s3109_s4 + $0x128] sm:$0xff] %v1660_v38  ;;  %1663 = vst [vmem:[%s3109_s4 + $0x130] sm:$0xff] %v1662_v39  ;;  %v1672_v44 = vld [vmem:[#allocation4 + $0x158] sm:$0xff]  ;;  %v1674_v45 = vld [vmem:[#allocation4 + $0x160] sm:$0xff] }
 0x25a   :  { %1665 = vst [vmem:[%s3109_s4 + $0x138] sm:$0xff] %v1664_v40  ;;  %1667 = vst [vmem:[%s3109_s4 + $0x140] sm:$0xff] %v1666_v41  ;;  %v1676_v46 = vld [vmem:[#allocation4 + $0x168] sm:$0xff]  ;;  %v1678_v47 = vld [vmem:[#allocation4 + $0x170] sm:$0xff] }
 0x25b   :  { %1669 = vst [vmem:[%s3109_s4 + $0x148] sm:$0xff] %v1668_v42  ;;  %1671 = vst [vmem:[%s3109_s4 + $0x150] sm:$0xff] %v1670_v43  ;;  %v1680_v48 = vld [vmem:[#allocation4 + $0x178] sm:$0xff] }
 0x25c   :  { %1673 = vst [vmem:[%s3109_s4 + $0x158] sm:$0xff] %v1672_v44  ;;  %1675 = vst [vmem:[%s3109_s4 + $0x160] sm:$0xff] %v1674_v45 }
 0x25d   :  { %1677 = vst [vmem:[%s3109_s4 + $0x168] sm:$0xff] %v1676_v46  ;;  %1679 = vst [vmem:[%s3109_s4 + $0x170] sm:$0xff] %v1678_v47 }
 0x25e   :  { %1681 = vst [vmem:[%s3109_s4 + $0x178] sm:$0xff] %v1680_v48 }
 0x25f   :  { %2549 = dma.done.wait [#allocation3], 4096  }
 0x260   :  { %2550 = vsyncadd [#allocation3], 4294963200 }
 0x261   :  { %1690 = vsyncpa [#allocation3], 1 }

</bundles_post_ra>
